<compile_context>
chip_gen: v5e
topology: v5e:2x2
jax: 0.10.0
libtpu: 0.0.40
codegen_flags: <defaults>
</compile_context>

<pallas_src>
import functools
import math

import jax
import jax.numpy as jnp
from jax.experimental import pallas as pl
from jax.experimental.pallas import tpu as pltpu

# ----------------------------- model config ---------------------------------
VOCAB = 128
D_MODEL = 32
N_HEADS = 4
HEAD_DIM = D_MODEL // N_HEADS
D_FF = 64
MAX_SEQ = 8


# ------------------------------ Pallas kernel -------------------------------
def _gpt_block_kernel(ids_ref, mask_ref, smalls_ref, wbig_ref, tokw2_ref,
                      out_ref):
    f32 = jnp.float32
    bf16 = jnp.bfloat16

    n_rows = ids_ref.shape[0]                 # B * MAX_SEQ (= 16)
    n_batch = n_rows // MAX_SEQ               # static

    # ---- unpack packed weight slabs (static sublane/lane slices) -----------
    tok_emb = tokw2_ref[0:VOCAB, :]                         # (128, 32) bf16
    w2 = tokw2_ref[VOCAB:VOCAB + D_FF, :]                   # (64, 32)  bf16
    w_qkv = wbig_ref[0:D_MODEL, :]                          # (32, 128) bf16
    w_o = wbig_ref[D_MODEL:2 * D_MODEL, 0:D_MODEL]          # (32, 32)  bf16
    w1 = wbig_ref[2 * D_MODEL:3 * D_MODEL, 0:D_FF]          # (32, 64)  bf16
    w_out = wbig_ref[3 * D_MODEL:4 * D_MODEL, :]            # (32, 128) bf16

    ln1_g = smalls_ref[0:1, 0:D_MODEL]
    ln1_b = smalls_ref[1:2, 0:D_MODEL]
    ln2_g = smalls_ref[2:3, 0:D_MODEL]
    ln2_b = smalls_ref[3:4, 0:D_MODEL]
    lnf_g = smalls_ref[4:5, 0:D_MODEL]
    lnf_b = smalls_ref[5:6, 0:D_MODEL]
    b2 = smalls_ref[6:7, 0:D_MODEL]
    b1 = smalls_ref[7:8, 0:D_FF]
    pos = smalls_ref[8:8 + MAX_SEQ, 0:D_MODEL]              # (8, 32) f32

    def layernorm(x, g, b):                  # two-pass: robust to large scales
        mu = jnp.mean(x, axis=-1, keepdims=True)
        d = x - mu
        var = jnp.mean(d * d, axis=-1, keepdims=True)
        return d * jax.lax.rsqrt(var + 1e-5) * g + b

    # ---- fused token embedding (one-hot MXU matmul) + positional add -------
    ids = ids_ref[...]                                             # (N,1) i32
    vid = jax.lax.broadcasted_iota(jnp.int32, (n_rows, VOCAB), 1)
    onehot = (vid == ids).astype(bf16)                             # (N, V)
    pos_flat = jnp.concatenate([pos] * n_batch, axis=0)            # (N, D) f32
    h = jnp.dot(onehot, tok_emb, preferred_element_type=f32) + pos_flat

    # ---- attention bias: same-sequence AND causal AND key-not-masked -------
    # Positions derived in-kernel (MAX_SEQ is a power of 2 -> bit masks).
    qi = jax.lax.broadcasted_iota(jnp.int32, (n_rows, n_rows), 0)
    ki = jax.lax.broadcasted_iota(jnp.int32, (n_rows, n_rows), 1)
    qpos = qi & (MAX_SEQ - 1)
    kpos = ki & (MAX_SEQ - 1)
    same_seq = (qi - qpos) == (ki - kpos)       # same sequence-start offset
    causal = kpos <= qpos
    keep = same_seq & causal & (mask_ref[...] > 0.5)
    bias = jnp.where(keep, f32(0.0), f32(-1e9))                    # (N, N) f32
    # NOTE: padded / masked QUERY rows are not masked as queries (standard
    # padding semantics: their logits are discarded / loss-masked downstream).

    # ---- pre-LN multi-head self-attention -----------------------------------
    x1 = layernorm(h, ln1_g, ln1_b).astype(bf16)                   # (N, D)
    # ONE fused QKV matmul; 1/sqrt(hd) is pre-folded into the Q columns.
    qkv = jnp.dot(x1, w_qkv, preferred_element_type=f32).astype(bf16)  # (N,128)

    def heads(base):                     # static lane slices -> (H, N, hd)
        return jnp.stack(
            [qkv[:, base + hh * HEAD_DIM: base + (hh + 1) * HEAD_DIM]
             for hh in range(N_HEADS)], axis=0)

    qh = heads(0)
    kh = heads(D_MODEL)
    vh = heads(2 * D_MODEL)

    s = jnp.einsum('hqd,hkd->hqk', qh, kh,
                   preferred_element_type=f32) + bias[None]        # (H,N,N)
    m = jnp.max(s, axis=-1, keepdims=True)                         # f32 softmax
    p = jnp.exp(s - m)
    a = p * pl.reciprocal(jnp.sum(p, axis=-1, keepdims=True), approx=True)
    ao = jnp.einsum('hqk,hkd->hqd', a.astype(bf16), vh,
                    preferred_element_type=f32)                    # (H,N,hd)
    # lane-concat heads -> ONE output-projection matmul
    attn = jnp.concatenate([ao[hh] for hh in range(N_HEADS)], axis=-1)  # (N,D)
    h = h + jnp.dot(attn.astype(bf16), w_o, preferred_element_type=f32)

    # ------------------------------ GELU MLP ---------------------------------
    x2 = layernorm(h, ln2_g, ln2_b).astype(bf16)
    f = jnp.dot(x2, w1, preferred_element_type=f32) + b1
    # TODO(synk): tanh-approx GELU (PyTorch nn.GELU default is exact erf).
    g = 0.5 * f * (1.0 + jnp.tanh(0.7978845608028654
                                  * (f + 0.044715 * f * f * f)))
    h = h + jnp.dot(g.astype(bf16), w2, preferred_element_type=f32) + b2

    # ------------------- final LN + lane-dense logits ------------------------
    xf = layernorm(h, lnf_g, lnf_b).astype(bf16)
    out_ref[...] = jnp.dot(xf, w_out, preferred_element_type=f32)


def _full_spec(shape):
    nd = len(shape)
    return pl.BlockSpec(shape, lambda i, _nd=nd: (0,) * _nd)


def gpt_forward(ids_flat, mask_flat, smalls, w_big, tok_w2):
    """ids_flat (N,1) i32, mask_flat (1,N) f32, packed weight slabs."""
    n_rows = ids_flat.shape[0]
    inputs = (ids_flat, mask_flat, smalls, w_big, tok_w2)
    return pl.pallas_call(
        _gpt_block_kernel,
        out_shape=jax.ShapeDtypeStruct((n_rows, VOCAB), jnp.float32),
        grid=(1,),
        in_specs=[_full_spec(a.shape) for a in inputs],
        out_specs=_full_spec((n_rows, VOCAB)),
        compiler_params=pltpu.CompilerParams(
            dimension_semantics=("arbitrary",)),
    )(*inputs)


# ---------------- weight layout plumbing (outside the kernel, free) ----------
def _prepare_kernel_weights(params):
    bf16 = jnp.bfloat16

    # Fused [Wq | Wk | Wv] (D, 3D), column order = (kind, head, hd).
    # Fold the attention scale 1/sqrt(hd) into the Q columns, pad lanes to 128.
    wqkv = params['w_qkv'].reshape(D_MODEL, 3, N_HEADS, HEAD_DIM)
    wqkv = wqkv.at[:, 0].multiply(1.0 / math.sqrt(HEAD_DIM))
    wqkv = wqkv.reshape(D_MODEL, 3 * D_MODEL)
    wqkv_pad = jnp.pad(wqkv, ((0, 0), (0, 128 - 3 * D_MODEL)))      # (32,128)

    w_o_pad = jnp.pad(params['w_o'], ((0, 0), (0, 128 - D_MODEL)))  # (32,128)
    w1_pad = jnp.pad(params['w1'], ((0, 0), (0, 128 - D_FF)))       # (32,128)
    w_out = params['w_out']                                         # (32,128)
    w_big = jnp.concatenate([wqkv_pad, w_o_pad, w1_pad, w_out],
                            axis=0).astype(bf16)                    # (128,128)

    tok_w2 = jnp.concatenate([params['tok_emb'], params['w2']],
                             axis=0).astype(bf16)                   # (192,32)

    def row(v, width):
        return jnp.pad(v.reshape(1, -1), ((0, 0), (0, 128 - width)))

    smalls = jnp.concatenate([
        row(params['ln1_g'], D_MODEL), row(params['ln1_b'], D_MODEL),
        row(params['ln2_g'], D_MODEL), row(params['ln2_b'], D_MODEL),
        row(params['lnf_g'], D_MODEL), row(params['lnf_b'], D_MODEL),
        row(params['b2'], D_MODEL), row(params['b1'], D_FF),
        jnp.pad(params['pos_emb'], ((0, 0), (0, 128 - D_MODEL))),   # rows 8..15
    ], axis=0).astype(jnp.float32)                                  # (16,128)

    return {'smalls': smalls, 'w_big': w_big, 'tok_w2': tok_w2}


@functools.partial(jax.jit, static_argnames=('t_pad',))
def _model_apply(kw, inp, mask, *, t_pad):
    B, T = inp.shape
    pad = t_pad - T
    ids = jnp.pad(inp.astype(jnp.int32), ((0, 0), (0, pad)))       # pad token 0
    maskf = jnp.pad(mask.astype(jnp.float32), ((0, 0), (0, pad)))  # pad = masked
    n = B * t_pad
    ids_flat = ids.reshape(n, 1)
    mask_flat = maskf.reshape(1, n)
    logits_flat = gpt_forward(ids_flat, mask_flat,
                              kw['smalls'], kw['w_big'], kw['tok_w2'])
    return logits_flat.reshape(B, t_pad, VOCAB)[:, :T]


# ------------------------- wrapper (JAX port) --------------------------------
class AutoregressiveWrapper:
    def __init__(self, params):
        self.params = params
        self.max_sequence_length = MAX_SEQ
        self._kweights = _prepare_kernel_weights(params)

    def model(self, inp, mask):
        return _model_apply(self._kweights, inp, mask,
                            t_pad=self.max_sequence_length)

    def forward(self, x, mask):
        inp, target = x[:, :-1], x[:, 1:]
        mask = mask[:, :-1]
        output = self.model(inp, mask)
        return output, target

    def next_token_probabilities(self, x, mask, temperature=1.0):
        logits = self.model(x, mask)[:, -1] / temperature
        return jax.nn.softmax(logits, axis=-1)

    def count_parameters(self):
        n = sum(int(p.size) for p in self.params.values())
        return n, n, n * 4 / 1024 ** 3

    # TODO(synk): beam-search `predict_next` (tokenizer + host-side Python loop)
    # has no Pallas equivalent and is intentionally not ported.


# ----------------------------- param init ------------------------------------
def init_params(key):
    ks = jax.random.split(key, 6)
    s = 0.02
    return {
        'tok_emb': s * jax.random.normal(ks[0], (VOCAB, D_MODEL), jnp.float32),
        'pos_emb': s * jax.random.normal(ks[1], (MAX_SEQ, D_MODEL), jnp.float32),
        'ln1_g': jnp.ones((1, D_MODEL), jnp.float32),
        'ln1_b': jnp.zeros((1, D_MODEL), jnp.float32),
        # fused [Wq | Wk | Wv]
        'w_qkv': s * jax.random.normal(ks[2], (D_MODEL, 3 * D_MODEL), jnp.float32),
        'w_o': s * jax.random.normal(ks[3], (D_MODEL, D_MODEL), jnp.float32),
        'ln2_g': jnp.ones((1, D_MODEL), jnp.float32),
        'ln2_b': jnp.zeros((1, D_MODEL), jnp.float32),
        'w1': s * jax.random.normal(ks[4], (D_MODEL, D_FF), jnp.float32),
        'b1': jnp.zeros((1, D_FF), jnp.float32),
        'w2': s * jax.random.normal(ks[5], (D_FF, D_MODEL), jnp.float32),
        'b2': jnp.zeros((1, D_MODEL), jnp.float32),
        'lnf_g': jnp.ones((1, D_MODEL), jnp.float32),
        'lnf_b': jnp.zeros((1, D_MODEL), jnp.float32),
        'w_out': s * jax.random.normal(jax.random.fold_in(key, 99),
                                       (D_MODEL, VOCAB), jnp.float32),
    }


# --------------------------------- main ---------------------------------------
if __name__ == "__main__":
    key = jax.random.PRNGKey(0)
    pkey, xkey = jax.random.split(key)

    params = init_params(pkey)
    wrapper = AutoregressiveWrapper(params)

    B, S = 2, MAX_SEQ
    x = jax.random.randint(xkey, (B, S), 0, VOCAB, dtype=jnp.int32)
    mask = jnp.ones((B, S), dtype=jnp.int32)
    mask = mask.at[1, S - 2:].set(0)          # pad the tail of sequence 1

    logits, target = wrapper.forward(x, mask)
    logits = jax.block_until_ready(logits)
    target = jax.block_until_ready(target)

    assert logits.shape == (B, S - 1, VOCAB), logits.shape
    assert target.shape == (B, S - 1), target.shape
    assert bool(jnp.all(jnp.isfinite(logits)))
    assert bool(jnp.all(target == x[:, 1:]))

    print("KERNEL_OK")
</pallas_src>

<mosaic_0001>
module attributes {stable_mosaic.version = 11 : i64} {
  func.func @_gpt_block_kernel(%arg0: i32, %arg1: memref<16x1xi32, #tpu.memory_space<vmem>>, %arg2: memref<1x16xf32, #tpu.memory_space<vmem>>, %arg3: memref<16x128xf32, #tpu.memory_space<vmem>>, %arg4: memref<128x128xbf16, #tpu.memory_space<vmem>>, %arg5: memref<192x32xbf16, #tpu.memory_space<vmem>>, %arg6: memref<16x128xf32, #tpu.memory_space<vmem>>) attributes {dimension_semantics = [#tpu.dimension_semantics<arbitrary>], iteration_bounds = array<i64: 1>, scalar_prefetch = 0 : i64, scratch_operands = 0 : i64, tpu.core_type = #tpu.core_type<tc>, window_params = [{pipeline_mode = #tpu.pipeline_mode<synchronous>, transform_indices = @transform_0, window_bounds = array<i64: 16, 1>}, {pipeline_mode = #tpu.pipeline_mode<synchronous>, transform_indices = @transform_1, window_bounds = array<i64: 1, 16>}, {pipeline_mode = #tpu.pipeline_mode<synchronous>, transform_indices = @transform_2, window_bounds = array<i64: 16, 128>}, {pipeline_mode = #tpu.pipeline_mode<synchronous>, transform_indices = @transform_3, window_bounds = array<i64: 128, 128>}, {pipeline_mode = #tpu.pipeline_mode<synchronous>, transform_indices = @transform_4, window_bounds = array<i64: 192, 32>}, {pipeline_mode = #tpu.pipeline_mode<synchronous>, transform_indices = @transform_5, window_bounds = array<i64: 16, 128>}]} {
    %c0 = arith.constant 0 : index
    %c0_0 = arith.constant 0 : index
    %0 = vector.load %arg5[%c0, %c0_0] : memref<192x32xbf16, #tpu.memory_space<vmem>>, vector<128x32xbf16>
    %c128 = arith.constant 128 : index
    %c0_1 = arith.constant 0 : index
    %1 = vector.load %arg5[%c128, %c0_1] : memref<192x32xbf16, #tpu.memory_space<vmem>>, vector<64x32xbf16>
    %c0_2 = arith.constant 0 : index
    %c0_3 = arith.constant 0 : index
    %2 = vector.load %arg4[%c0_2, %c0_3] : memref<128x128xbf16, #tpu.memory_space<vmem>>, vector<32x128xbf16>
    %c32 = arith.constant 32 : index
    %c0_4 = arith.constant 0 : index
    %3 = vector.load %arg4[%c32, %c0_4] : memref<128x128xbf16, #tpu.memory_space<vmem>>, vector<32x32xbf16>
    %c64 = arith.constant 64 : index
    %c0_5 = arith.constant 0 : index
    %4 = vector.load %arg4[%c64, %c0_5] : memref<128x128xbf16, #tpu.memory_space<vmem>>, vector<32x64xbf16>
    %c96 = arith.constant 96 : index
    %c0_6 = arith.constant 0 : index
    %5 = vector.load %arg4[%c96, %c0_6] : memref<128x128xbf16, #tpu.memory_space<vmem>>, vector<32x128xbf16>
    %c0_7 = arith.constant 0 : index
    %c0_8 = arith.constant 0 : index
    %6 = vector.load %arg3[%c0_7, %c0_8] : memref<16x128xf32, #tpu.memory_space<vmem>>, vector<1x32xf32>
    %c1 = arith.constant 1 : index
    %c0_9 = arith.constant 0 : index
    %7 = vector.load %arg3[%c1, %c0_9] : memref<16x128xf32, #tpu.memory_space<vmem>>, vector<1x32xf32>
    %c2 = arith.constant 2 : index
    %c0_10 = arith.constant 0 : index
    %8 = vector.load %arg3[%c2, %c0_10] : memref<16x128xf32, #tpu.memory_space<vmem>>, vector<1x32xf32>
    %c3 = arith.constant 3 : index
    %c0_11 = arith.constant 0 : index
    %9 = vector.load %arg3[%c3, %c0_11] : memref<16x128xf32, #tpu.memory_space<vmem>>, vector<1x32xf32>
    %c4 = arith.constant 4 : index
    %c0_12 = arith.constant 0 : index
    %10 = vector.load %arg3[%c4, %c0_12] : memref<16x128xf32, #tpu.memory_space<vmem>>, vector<1x32xf32>
    %c5 = arith.constant 5 : index
    %c0_13 = arith.constant 0 : index
    %11 = vector.load %arg3[%c5, %c0_13] : memref<16x128xf32, #tpu.memory_space<vmem>>, vector<1x32xf32>
    %c6 = arith.constant 6 : index
    %c0_14 = arith.constant 0 : index
    %12 = vector.load %arg3[%c6, %c0_14] : memref<16x128xf32, #tpu.memory_space<vmem>>, vector<1x32xf32>
    %c7 = arith.constant 7 : index
    %c0_15 = arith.constant 0 : index
    %13 = vector.load %arg3[%c7, %c0_15] : memref<16x128xf32, #tpu.memory_space<vmem>>, vector<1x64xf32>
    %c8 = arith.constant 8 : index
    %c0_16 = arith.constant 0 : index
    %14 = vector.load %arg3[%c8, %c0_16] : memref<16x128xf32, #tpu.memory_space<vmem>>, vector<8x32xf32>
    %c0_17 = arith.constant 0 : index
    %c0_18 = arith.constant 0 : index
    %15 = vector.load %arg1[%c0_17, %c0_18] : memref<16x1xi32, #tpu.memory_space<vmem>>, vector<16x1xi32>
    %16 = tpu.iota {dimensions = array<i32: 1>} : vector<16x128xi32>
    %17 = vector.broadcast %15 : vector<16x1xi32> to vector<16x128xi32>
    %18 = arith.cmpi eq, %16, %17 : vector<16x128xi32>
    %19 = arith.extui %18 : vector<16x128xi1> to vector<16x128xi32>
    %20 = arith.sitofp %19 : vector<16x128xi32> to vector<16x128xf32>
    %21 = arith.truncf %20 : vector<16x128xf32> to vector<16x128xbf16>
    %22 = tpu.concatenate %14, %14 in 0 : vector<8x32xf32>, vector<8x32xf32> -> vector<16x32xf32>
    %cst = arith.constant dense<0.000000e+00> : vector<16x32xf32>
    %23 = tpu.matmul %21, %0, %cst {dimension_numbers = #tpu.dot_dimension_numbers<[1], [0], [0], [1], [0, 0, 1, 1], [], []>} : vector<16x128xbf16>, vector<128x32xbf16>, vector<16x32xf32> -> vector<16x32xf32>
    %24 = arith.addf %23, %22 : vector<16x32xf32>
    %25 = tpu.iota {dimensions = array<i32: 0>} : vector<16x16xi32>
    %26 = tpu.iota {dimensions = array<i32: 1>} : vector<16x16xi32>
    %c7_i32 = arith.constant 7 : i32
    %27 = vector.broadcast %c7_i32 : i32 to vector<16x16xi32>
    %28 = arith.andi %25, %27 : vector<16x16xi32>
    %c7_i32_19 = arith.constant 7 : i32
    %29 = vector.broadcast %c7_i32_19 : i32 to vector<16x16xi32>
    %30 = arith.andi %26, %29 : vector<16x16xi32>
    %31 = arith.subi %25, %28 : vector<16x16xi32>
    %32 = arith.subi %26, %30 : vector<16x16xi32>
    %33 = arith.cmpi eq, %31, %32 : vector<16x16xi32>
    %34 = arith.cmpi sle, %30, %28 : vector<16x16xi32>
    %35 = arith.andi %33, %34 : vector<16x16xi1>
    %c0_20 = arith.constant 0 : index
    %c0_21 = arith.constant 0 : index
    %36 = vector.load %arg2[%c0_20, %c0_21] : memref<1x16xf32, #tpu.memory_space<vmem>>, vector<1x16xf32>
    %cst_22 = arith.constant 5.000000e-01 : f32
    %37 = vector.broadcast %cst_22 : f32 to vector<1x16xf32>
    %38 = arith.cmpf ogt, %36, %37 : vector<1x16xf32>
    %39 = vector.broadcast %38 : vector<1x16xi1> to vector<16x16xi1>
    %40 = arith.andi %35, %39 : vector<16x16xi1>
    %cst_23 = arith.constant 0.000000e+00 : f32
    %cst_24 = arith.constant -1.000000e+09 : f32
    %41 = vector.broadcast %cst_23 : f32 to vector<16x16xf32>
    %42 = vector.broadcast %cst_24 : f32 to vector<16x16xf32>
    %43 = arith.select %40, %41, %42 : vector<16x16xi1>, vector<16x16xf32>
    %cst_25 = arith.constant dense<0.000000e+00> : vector<16xf32>
    %44 = vector.multi_reduction <add>, %24, %cst_25 [1] : vector<16x32xf32> to vector<16xf32>
    %45 = vector.shape_cast %44 : vector<16xf32> to vector<16x1xf32>
    %cst_26 = arith.constant 3.200000e+01 : f32
    %46 = vector.broadcast %cst_26 : f32 to vector<16x1xf32>
    %47 = arith.divf %45, %46 : vector<16x1xf32>
    %48 = vector.broadcast %47 : vector<16x1xf32> to vector<16x32xf32>
    %49 = arith.subf %24, %48 : vector<16x32xf32>
    %50 = arith.mulf %49, %49 : vector<16x32xf32>
    %cst_27 = arith.constant dense<0.000000e+00> : vector<16xf32>
    %51 = vector.multi_reduction <add>, %50, %cst_27 [1] : vector<16x32xf32> to vector<16xf32>
    %52 = vector.shape_cast %51 : vector<16xf32> to vector<16x1xf32>
    %cst_28 = arith.constant 3.200000e+01 : f32
    %53 = vector.broadcast %cst_28 : f32 to vector<16x1xf32>
    %54 = arith.divf %52, %53 : vector<16x1xf32>
    %cst_29 = arith.constant 9.99999974E-6 : f32
    %55 = vector.broadcast %cst_29 : f32 to vector<16x1xf32>
    %56 = arith.addf %54, %55 : vector<16x1xf32>
    %57 = math.rsqrt %56 : vector<16x1xf32>
    %58 = vector.broadcast %57 : vector<16x1xf32> to vector<16x32xf32>
    %59 = arith.mulf %49, %58 : vector<16x32xf32>
    %60 = vector.broadcast %6 : vector<1x32xf32> to vector<16x32xf32>
    %61 = arith.mulf %59, %60 : vector<16x32xf32>
    %62 = vector.broadcast %7 : vector<1x32xf32> to vector<16x32xf32>
    %63 = arith.addf %61, %62 : vector<16x32xf32>
    %64 = arith.truncf %63 : vector<16x32xf32> to vector<16x32xbf16>
    %cst_30 = arith.constant dense<0.000000e+00> : vector<16x128xf32>
    %65 = tpu.matmul %64, %2, %cst_30 {dimension_numbers = #tpu.dot_dimension_numbers<[1], [0], [0], [1], [0, 0, 1, 1], [], []>} : vector<16x32xbf16>, vector<32x128xbf16>, vector<16x128xf32> -> vector<16x128xf32>
    %66 = arith.truncf %65 : vector<16x128xf32> to vector<16x128xbf16>
    %67 = vector.extract_strided_slice %66 {offsets = [0, 0], sizes = [16, 8], strides = [1, 1]} : vector<16x128xbf16> to vector<16x8xbf16>
    %68 = vector.extract_strided_slice %66 {offsets = [0, 8], sizes = [16, 8], strides = [1, 1]} : vector<16x128xbf16> to vector<16x8xbf16>
    %69 = vector.extract_strided_slice %66 {offsets = [0, 16], sizes = [16, 8], strides = [1, 1]} : vector<16x128xbf16> to vector<16x8xbf16>
    %70 = vector.extract_strided_slice %66 {offsets = [0, 24], sizes = [16, 8], strides = [1, 1]} : vector<16x128xbf16> to vector<16x8xbf16>
    %71 = vector.shape_cast %67 : vector<16x8xbf16> to vector<1x16x8xbf16>
    %72 = vector.shape_cast %68 : vector<16x8xbf16> to vector<1x16x8xbf16>
    %73 = vector.shape_cast %69 : vector<16x8xbf16> to vector<1x16x8xbf16>
    %74 = vector.shape_cast %70 : vector<16x8xbf16> to vector<1x16x8xbf16>
    %75 = tpu.concatenate %71, %72, %73, %74 in 0 : vector<1x16x8xbf16>, vector<1x16x8xbf16>, vector<1x16x8xbf16>, vector<1x16x8xbf16> -> vector<4x16x8xbf16>
    %76 = vector.extract_strided_slice %66 {offsets = [0, 32], sizes = [16, 8], strides = [1, 1]} : vector<16x128xbf16> to vector<16x8xbf16>
    %77 = vector.extract_strided_slice %66 {offsets = [0, 40], sizes = [16, 8], strides = [1, 1]} : vector<16x128xbf16> to vector<16x8xbf16>
    %78 = vector.extract_strided_slice %66 {offsets = [0, 48], sizes = [16, 8], strides = [1, 1]} : vector<16x128xbf16> to vector<16x8xbf16>
    %79 = vector.extract_strided_slice %66 {offsets = [0, 56], sizes = [16, 8], strides = [1, 1]} : vector<16x128xbf16> to vector<16x8xbf16>
    %80 = vector.shape_cast %76 : vector<16x8xbf16> to vector<1x16x8xbf16>
    %81 = vector.shape_cast %77 : vector<16x8xbf16> to vector<1x16x8xbf16>
    %82 = vector.shape_cast %78 : vector<16x8xbf16> to vector<1x16x8xbf16>
    %83 = vector.shape_cast %79 : vector<16x8xbf16> to vector<1x16x8xbf16>
    %84 = tpu.concatenate %80, %81, %82, %83 in 0 : vector<1x16x8xbf16>, vector<1x16x8xbf16>, vector<1x16x8xbf16>, vector<1x16x8xbf16> -> vector<4x16x8xbf16>
    %85 = vector.extract_strided_slice %66 {offsets = [0, 64], sizes = [16, 8], strides = [1, 1]} : vector<16x128xbf16> to vector<16x8xbf16>
    %86 = vector.extract_strided_slice %66 {offsets = [0, 72], sizes = [16, 8], strides = [1, 1]} : vector<16x128xbf16> to vector<16x8xbf16>
    %87 = vector.extract_strided_slice %66 {offsets = [0, 80], sizes = [16, 8], strides = [1, 1]} : vector<16x128xbf16> to vector<16x8xbf16>
    %88 = vector.extract_strided_slice %66 {offsets = [0, 88], sizes = [16, 8], strides = [1, 1]} : vector<16x128xbf16> to vector<16x8xbf16>
    %89 = vector.shape_cast %85 : vector<16x8xbf16> to vector<1x16x8xbf16>
    %90 = vector.shape_cast %86 : vector<16x8xbf16> to vector<1x16x8xbf16>
    %91 = vector.shape_cast %87 : vector<16x8xbf16> to vector<1x16x8xbf16>
    %92 = vector.shape_cast %88 : vector<16x8xbf16> to vector<1x16x8xbf16>
    %93 = tpu.concatenate %89, %90, %91, %92 in 0 : vector<1x16x8xbf16>, vector<1x16x8xbf16>, vector<1x16x8xbf16>, vector<1x16x8xbf16> -> vector<4x16x8xbf16>
    "tpu.trace_start"() <{level = 10 : i32, message = "hqd,hkd->hqk"}> : () -> ()
    %cst_31 = arith.constant dense<0.000000e+00> : vector<4x16x16xf32>
    %94 = tpu.matmul %75, %84, %cst_31 {dimension_numbers = #tpu.dot_dimension_numbers<[2], [2], [1], [1], [0, 0, 0, 1, 1, 1], [0], [0]>} : vector<4x16x8xbf16>, vector<4x16x8xbf16>, vector<4x16x16xf32> -> vector<4x16x16xf32>
    "tpu.trace_stop"() : () -> ()
    %95 = vector.shape_cast %43 : vector<16x16xf32> to vector<1x16x16xf32>
    %96 = vector.broadcast %95 : vector<1x16x16xf32> to vector<4x16x16xf32>
    %97 = arith.addf %94, %96 : vector<4x16x16xf32>
    %cst_32 = arith.constant dense<0xFF800000> : vector<4x16xf32>
    %98 = vector.multi_reduction <maximumf>, %97, %cst_32 [2] : vector<4x16x16xf32> to vector<4x16xf32>
    %99 = vector.shape_cast %98 : vector<4x16xf32> to vector<4x16x1xf32>
    %100 = vector.broadcast %99 : vector<4x16x1xf32> to vector<4x16x16xf32>
    %101 = arith.subf %97, %100 : vector<4x16x16xf32>
    %102 = math.exp %101 : vector<4x16x16xf32>
    %cst_33 = arith.constant dense<0.000000e+00> : vector<4x16xf32>
    %103 = vector.multi_reduction <add>, %102, %cst_33 [2] : vector<4x16x16xf32> to vector<4x16xf32>
    %104 = vector.shape_cast %103 : vector<4x16xf32> to vector<4x16x1xf32>
    %105 = tpu.reciprocal %104 {approx = true} : vector<4x16x1xf32> -> vector<4x16x1xf32>
    %106 = vector.broadcast %105 : vector<4x16x1xf32> to vector<4x16x16xf32>
    %107 = arith.mulf %102, %106 : vector<4x16x16xf32>
    %108 = arith.truncf %107 : vector<4x16x16xf32> to vector<4x16x16xbf16>
    "tpu.trace_start"() <{level = 10 : i32, message = "hqk,hkd->hqd"}> : () -> ()
    %cst_34 = arith.constant dense<0.000000e+00> : vector<4x16x8xf32>
    %109 = tpu.matmul %108, %93, %cst_34 {dimension_numbers = #tpu.dot_dimension_numbers<[2], [1], [1], [2], [0, 0, 0, 1, 1, 2], [0], [0]>} : vector<4x16x16xbf16>, vector<4x16x8xbf16>, vector<4x16x8xf32> -> vector<4x16x8xf32>
    "tpu.trace_stop"() : () -> ()
    %110 = vector.extract_strided_slice %109 {offsets = [0, 0, 0], sizes = [1, 16, 8], strides = [1, 1, 1]} : vector<4x16x8xf32> to vector<1x16x8xf32>
    %111 = vector.shape_cast %110 : vector<1x16x8xf32> to vector<16x8xf32>
    %112 = vector.extract_strided_slice %109 {offsets = [1, 0, 0], sizes = [1, 16, 8], strides = [1, 1, 1]} : vector<4x16x8xf32> to vector<1x16x8xf32>
    %113 = vector.shape_cast %112 : vector<1x16x8xf32> to vector<16x8xf32>
    %114 = vector.extract_strided_slice %109 {offsets = [2, 0, 0], sizes = [1, 16, 8], strides = [1, 1, 1]} : vector<4x16x8xf32> to vector<1x16x8xf32>
    %115 = vector.shape_cast %114 : vector<1x16x8xf32> to vector<16x8xf32>
    %116 = vector.extract_strided_slice %109 {offsets = [3, 0, 0], sizes = [1, 16, 8], strides = [1, 1, 1]} : vector<4x16x8xf32> to vector<1x16x8xf32>
    %117 = vector.shape_cast %116 : vector<1x16x8xf32> to vector<16x8xf32>
    %118 = tpu.concatenate %111, %113, %115, %117 in 1 : vector<16x8xf32>, vector<16x8xf32>, vector<16x8xf32>, vector<16x8xf32> -> vector<16x32xf32>
    %119 = arith.truncf %118 : vector<16x32xf32> to vector<16x32xbf16>
    %cst_35 = arith.constant dense<0.000000e+00> : vector<16x32xf32>
    %120 = tpu.matmul %119, %3, %cst_35 {dimension_numbers = #tpu.dot_dimension_numbers<[1], [0], [0], [1], [0, 0, 1, 1], [], []>} : vector<16x32xbf16>, vector<32x32xbf16>, vector<16x32xf32> -> vector<16x32xf32>
    %121 = arith.addf %24, %120 : vector<16x32xf32>
    %cst_36 = arith.constant dense<0.000000e+00> : vector<16xf32>
    %122 = vector.multi_reduction <add>, %121, %cst_36 [1] : vector<16x32xf32> to vector<16xf32>
    %123 = vector.shape_cast %122 : vector<16xf32> to vector<16x1xf32>
    %cst_37 = arith.constant 3.200000e+01 : f32
    %124 = vector.broadcast %cst_37 : f32 to vector<16x1xf32>
    %125 = arith.divf %123, %124 : vector<16x1xf32>
    %126 = vector.broadcast %125 : vector<16x1xf32> to vector<16x32xf32>
    %127 = arith.subf %121, %126 : vector<16x32xf32>
    %128 = arith.mulf %127, %127 : vector<16x32xf32>
    %cst_38 = arith.constant dense<0.000000e+00> : vector<16xf32>
    %129 = vector.multi_reduction <add>, %128, %cst_38 [1] : vector<16x32xf32> to vector<16xf32>
    %130 = vector.shape_cast %129 : vector<16xf32> to vector<16x1xf32>
    %cst_39 = arith.constant 3.200000e+01 : f32
    %131 = vector.broadcast %cst_39 : f32 to vector<16x1xf32>
    %132 = arith.divf %130, %131 : vector<16x1xf32>
    %cst_40 = arith.constant 9.99999974E-6 : f32
    %133 = vector.broadcast %cst_40 : f32 to vector<16x1xf32>
    %134 = arith.addf %132, %133 : vector<16x1xf32>
    %135 = math.rsqrt %134 : vector<16x1xf32>
    %136 = vector.broadcast %135 : vector<16x1xf32> to vector<16x32xf32>
    %137 = arith.mulf %127, %136 : vector<16x32xf32>
    %138 = vector.broadcast %8 : vector<1x32xf32> to vector<16x32xf32>
    %139 = arith.mulf %137, %138 : vector<16x32xf32>
    %140 = vector.broadcast %9 : vector<1x32xf32> to vector<16x32xf32>
    %141 = arith.addf %139, %140 : vector<16x32xf32>
    %142 = arith.truncf %141 : vector<16x32xf32> to vector<16x32xbf16>
    %cst_41 = arith.constant dense<0.000000e+00> : vector<16x64xf32>
    %143 = tpu.matmul %142, %4, %cst_41 {dimension_numbers = #tpu.dot_dimension_numbers<[1], [0], [0], [1], [0, 0, 1, 1], [], []>} : vector<16x32xbf16>, vector<32x64xbf16>, vector<16x64xf32> -> vector<16x64xf32>
    %144 = vector.broadcast %13 : vector<1x64xf32> to vector<16x64xf32>
    %145 = arith.addf %143, %144 : vector<16x64xf32>
    %cst_42 = arith.constant 5.000000e-01 : f32
    %146 = vector.broadcast %cst_42 : f32 to vector<16x64xf32>
    %147 = arith.mulf %146, %145 : vector<16x64xf32>
    %cst_43 = arith.constant 4.471500e-02 : f32
    %148 = vector.broadcast %cst_43 : f32 to vector<16x64xf32>
    %149 = arith.mulf %148, %145 : vector<16x64xf32>
    %150 = arith.mulf %149, %145 : vector<16x64xf32>
    %151 = arith.mulf %150, %145 : vector<16x64xf32>
    %152 = arith.addf %145, %151 : vector<16x64xf32>
    %cst_44 = arith.constant 0.797884583 : f32
    %153 = vector.broadcast %cst_44 : f32 to vector<16x64xf32>
    %154 = arith.mulf %153, %152 : vector<16x64xf32>
    %155 = math.tanh %154 : vector<16x64xf32>
    %cst_45 = arith.constant 1.000000e+00 : f32
    %156 = vector.broadcast %cst_45 : f32 to vector<16x64xf32>
    %157 = arith.addf %156, %155 : vector<16x64xf32>
    %158 = arith.mulf %147, %157 : vector<16x64xf32>
    %159 = arith.truncf %158 : vector<16x64xf32> to vector<16x64xbf16>
    %cst_46 = arith.constant dense<0.000000e+00> : vector<16x32xf32>
    %160 = tpu.matmul %159, %1, %cst_46 {dimension_numbers = #tpu.dot_dimension_numbers<[1], [0], [0], [1], [0, 0, 1, 1], [], []>} : vector<16x64xbf16>, vector<64x32xbf16>, vector<16x32xf32> -> vector<16x32xf32>
    %161 = arith.addf %121, %160 : vector<16x32xf32>
    %162 = vector.broadcast %12 : vector<1x32xf32> to vector<16x32xf32>
    %163 = arith.addf %161, %162 : vector<16x32xf32>
    %cst_47 = arith.constant dense<0.000000e+00> : vector<16xf32>
    %164 = vector.multi_reduction <add>, %163, %cst_47 [1] : vector<16x32xf32> to vector<16xf32>
    %165 = vector.shape_cast %164 : vector<16xf32> to vector<16x1xf32>
    %cst_48 = arith.constant 3.200000e+01 : f32
    %166 = vector.broadcast %cst_48 : f32 to vector<16x1xf32>
    %167 = arith.divf %165, %166 : vector<16x1xf32>
    %168 = vector.broadcast %167 : vector<16x1xf32> to vector<16x32xf32>
    %169 = arith.subf %163, %168 : vector<16x32xf32>
    %170 = arith.mulf %169, %169 : vector<16x32xf32>
    %cst_49 = arith.constant dense<0.000000e+00> : vector<16xf32>
    %171 = vector.multi_reduction <add>, %170, %cst_49 [1] : vector<16x32xf32> to vector<16xf32>
    %172 = vector.shape_cast %171 : vector<16xf32> to vector<16x1xf32>
    %cst_50 = arith.constant 3.200000e+01 : f32
    %173 = vector.broadcast %cst_50 : f32 to vector<16x1xf32>
    %174 = arith.divf %172, %173 : vector<16x1xf32>
    %cst_51 = arith.constant 9.99999974E-6 : f32
    %175 = vector.broadcast %cst_51 : f32 to vector<16x1xf32>
    %176 = arith.addf %174, %175 : vector<16x1xf32>
    %177 = math.rsqrt %176 : vector<16x1xf32>
    %178 = vector.broadcast %177 : vector<16x1xf32> to vector<16x32xf32>
    %179 = arith.mulf %169, %178 : vector<16x32xf32>
    %180 = vector.broadcast %10 : vector<1x32xf32> to vector<16x32xf32>
    %181 = arith.mulf %179, %180 : vector<16x32xf32>
    %182 = vector.broadcast %11 : vector<1x32xf32> to vector<16x32xf32>
    %183 = arith.addf %181, %182 : vector<16x32xf32>
    %184 = arith.truncf %183 : vector<16x32xf32> to vector<16x32xbf16>
    %cst_52 = arith.constant dense<0.000000e+00> : vector<16x128xf32>
    %185 = tpu.matmul %184, %5, %cst_52 {dimension_numbers = #tpu.dot_dimension_numbers<[1], [0], [0], [1], [0, 0, 1, 1], [], []>} : vector<16x32xbf16>, vector<32x128xbf16>, vector<16x128xf32> -> vector<16x128xf32>
    %c0_53 = arith.constant 0 : index
    %c0_54 = arith.constant 0 : index
    %186 = vector.load %arg6[%c0_53, %c0_54] : memref<16x128xf32, #tpu.memory_space<vmem>>, vector<16x128xf32>
    tpu.vector_store %arg6[%c0_53, %c0_54], %185 {strides = array<i32>} : memref<16x128xf32, #tpu.memory_space<vmem>>, vector<16x128xf32>,
    return
  }
  func.func @transform_0(%arg0: i32) -> (i32, i32) {
    %c0_i32 = arith.constant 0 : i32
    %c0_i32_0 = arith.constant 0 : i32
    %c0_i32_1 = arith.constant 0 : i32
    return %c0_i32, %c0_i32_0 : i32, i32
  }
  func.func @transform_1(%arg0: i32) -> (i32, i32) {
    %c0_i32 = arith.constant 0 : i32
    %c0_i32_0 = arith.constant 0 : i32
    %c0_i32_1 = arith.constant 0 : i32
    return %c0_i32, %c0_i32_0 : i32, i32
  }
  func.func @transform_2(%arg0: i32) -> (i32, i32) {
    %c0_i32 = arith.constant 0 : i32
    %c0_i32_0 = arith.constant 0 : i32
    %c0_i32_1 = arith.constant 0 : i32
    return %c0_i32, %c0_i32_0 : i32, i32
  }
  func.func @transform_3(%arg0: i32) -> (i32, i32) {
    %c0_i32 = arith.constant 0 : i32
    %c0_i32_0 = arith.constant 0 : i32
    %c0_i32_1 = arith.constant 0 : i32
    return %c0_i32, %c0_i32_0 : i32, i32
  }
  func.func @transform_4(%arg0: i32) -> (i32, i32) {
    %c0_i32 = arith.constant 0 : i32
    %c0_i32_0 = arith.constant 0 : i32
    %c0_i32_1 = arith.constant 0 : i32
    return %c0_i32, %c0_i32_0 : i32, i32
  }
  func.func @transform_5(%arg0: i32) -> (i32, i32) {
    %c0_i32 = arith.constant 0 : i32
    %c0_i32_0 = arith.constant 0 : i32
    %c0_i32_1 = arith.constant 0 : i32
    return %c0_i32, %c0_i32_0 : i32, i32
  }
}

</mosaic_0001>

<bundles_post_ra>
// kernel: _model_apply.1
= control target key start
LH: loop header
LB: loop body
LE: loop exit
PB: predicated region body
PF: predicated region fallthrough
CT: control target
= control target key end

     0   :  { %v72_v0 = vlaneseq  ;;  %v1074_v1 = vmov 0   ;;  %v1075_v29 = vmov 1.0|1.0   ;;  %vm173_vm13 = vcmask 261120   ;;  %s1077_s23 = smov 120   ;;  %s1078_s24 = smov 104   ;;  %s1366_s1 = inlined_call_operand.vmem [shape: f32[1,16], index: 1, kind: input, shape index: {}]   ;;  %s1367_s0 = inlined_call_operand.vmem [shape: s32[16,1], index: 0, kind: input, shape index: {}]   ;;  %s1368_s4 = inlined_call_operand.vmem [shape: bf16[192,32], index: 4, kind: input, shape index: {}]   ;;  %s1369_s2 = inlined_call_operand.vmem [shape: f32[16,128], index: 2, kind: input, shape index: {}]   ;;  %s1370_s3 = inlined_call_operand.vmem [shape: bf16[128,128], index: 3, kind: input, shape index: {}]   ;;  %s1371_s5 = inlined_call_operand.vmem [shape: f32[16,128], index: 5, kind: output, shape index: {}]  }
   0x1   :  { %1000 = vset.pattern.permute.xlu0 %v1074_v1  ;;  %v164_v2 = vld [vmem:[%s1366_s1] sm:$0x1]  ;;  %v975_v6 = vld [vmem:[%s1368_s4 + $0x38] sm:$0xff]  ;;  %v974_v8 = vld [vmem:[%s1368_s4 + $0x30] sm:$0xff]  ;;  %v1076_v37 = vmov 32.0   ;;  %s1079_s25 = smov 112  }
   0x2   :  { %v70_v3 = vld [vmem:[%s1367_s0] sm:$0xff]  ;;  %v73_v4 = vand.u32 127, %v72_v0  ;;  %v150_v5 = vshrl.u32 %v72_v0, 7  ;;  %vm165_vm0 = vcmp.gt.f32.partialorder %v164_v2, 0.5  ;;  %135 = vmatpush.bf16.msra.mxu0 %v975_v6  ;;  %v71_v17 = vld [vmem:[%s1367_s0 + $0x8] sm:$0xff]  ;;  %v971_v23 = vld [vmem:[%s1368_s4 + $0x18] sm:$0xff]  ;;  %1024 = vrcp.f32 %v1076_v37 }
   0x3   :  { %75 = vperm.xlu0 %1000, %v70_v3   ;;  %v166_v7 = vsel %vm165_vm0, 1, %v1074_v1  ;;  %v973_v19 = vld [vmem:[%s1368_s4 + $0x28] sm:$0xff]  ;;  %v972_v22 = vld [vmem:[%s1368_s4 + $0x20] sm:$0xff]  ;;  %v970_v24 = vld [vmem:[%s1368_s4 + $0x10] sm:$0xff]  ;;  %s1080_s1 = smov 96   ;;  %s1082_s26 = smov 64  }
   0x4   :  { %v151_v9 = vadd.s32 8, %v150_v5  ;;  %v152_v10 = vand.u32 7, %v150_v5  ;;  %v154_v11 = vand.u32 7, %v73_v4  ;;  %v167_v12 = vperm.slane %v166_v7, 0  ;;  %v969_v25 = vld [vmem:[%s1368_s4 + $0x8] sm:$0xff]  ;;  %v968_v26 = vld [vmem:[%s1368_s4] sm:$0xff] }
   0x5   :  { %v69_v30 = vld [vmem:[%s1369_s2 + $0x8] sm:$0xff]  ;;  %v980_v56 = vld [vmem:[%s1370_s3] sm:$0xff]  ;;  %s1083_s27 = smov 24   ;;  %s1084_s28 = smov 8  }
   0x6   :  { %v153_v13 = vand.u32 7, %v151_v9  ;;  %v155_v14 = vsub.s32 %v150_v5, %v152_v10  ;;  %v157_v15 = vsub.s32 %v73_v4, %v154_v11  ;;  %vm160_vm1 = vcmp.le.s32.totalorder %v154_v11, %v152_v10  ;;  %136 = vmatpush.bf16.msra.mxu0 %v974_v8  ;;  %v981_v54 = vld [vmem:[%s1370_s3 + $0x8] sm:$0xff]  ;;  %s1085_s0 = smov 16  }
   0x7   :  { %vm1128_vm2 = vcmp.eq.s32.totalorder %v167_v12, 1  ;;  %253 = vmatpush.bf16.msra.mxu1 %v981_v54 }
   0x8   :  { %v156_v18 = vsub.s32 %v151_v9, %v153_v13  ;;  %vm158_vm3 = vcmp.eq.s32.totalorder %v155_v14, %v157_v15  ;;  %vm161_vm4 = vcmp.le.s32.totalorder %v154_v11, %v153_v13  ;;  %v1025_v38 = vpop.eup %1024  ;;  %v1016_v11 = vld [vmem:[%s1369_s2] ss:$0 sm:$0xff] }
   0x9   :  { %vm1138_vm5 = vmand %vm158_vm3, %vm160_vm1  ;;  %v181_v39 = vmul.f32 32.0, %v1025_v38  ;;  %vm185_vm14 = vweird.f32 %v1025_v38 }
   0xa   :  { %vm159_vm6 = vcmp.eq.s32.totalorder %v156_v18, %v157_v15  ;;  %vm169_vm7 = vmand %vm1138_vm5, %vm1128_vm2  ;;  %137 = vmatpush.bf16.msra.mxu0 %v973_v19 }
   0xb   :  { %78 = vperm.xlu0 %1000, %v71_v17   ;;  %vm1146_vm8 = vmand %vm159_vm6, %vm161_vm4  ;;  %v182_v40 = vsub.f32 1.0, %v181_v39  ;;  %254 = vmatpush.bf16.msra.mxu1 %v980_v56  ;;  %v1017_v17 = vld [vmem:[%s1369_s2 + $0x1] ss:$0 sm:$0xff] }
   0xc   :  { %vm170_vm9 = vmand %vm1146_vm8, %vm1128_vm2  ;;  %vm603_vm2 = vcmask 195584  }
   0xd   :  { %v183_v41 = vmul.f32 %v1025_v38, %v182_v40 }
   0xe   :  { %138 = vmatpush.bf16.msra.mxu0 %v972_v22 }
   0xf   :  { %v184_v42 = vadd.f32 %v1025_v38, %v183_v41 }
  0x11   :  { %v1180_v43 = vsel %vm185_vm14, %v1025_v38, %v184_v42 }
  0x12   :  { %139 = vmatpush.bf16.msra.mxu0 %v971_v23 }
  0x16   :  { %140 = vmatpush.bf16.msra.mxu0 %v970_v24 }
  0x1a   :  { %141 = vmatpush.bf16.msra.mxu0 %v969_v25 }
  0x1e   :  { %142 = vmatpush.bf16.msra.mxu0 %v968_v26 }
  0x75   :  { %v76_v27 = vpop.permute.xlu0 %75 }
  0x76   :  { %vm80_vm10 = vcmp.eq.s32.totalorder %v73_v4, %v76_v27 }
  0x7d   :  { %v79_v28 = vpop.permute.xlu0 %78 }
  0x7e   :  { %vm81_vm11 = vcmp.eq.s32.totalorder %v73_v4, %v79_v28 }
  0x7f   :  { %vm905_vm12 = vmpackc.low %vm81_vm11, %vm80_vm10  ;;  %vm282_vm10 = vcmask 64512   ;;  %vm378_vm11 = vcmask 130048  }
  0x80   :  { %906 = vmatmul.msk.bf16.vlgmr.msra.gmra.mxu0 %vm905_vm12, %v1075_v29 }
  0xfd   :  { %v144_v31 = vpop.f32.mrf.mxu0 }
  0xfe   :  { %v1172_v32 = vadd.f32 %v144_v31, %v69_v30 }
 0x100   :  { %v174_v33 = vsel %vm173_vm13, %v1172_v32, 0.0 }
 0x101   :  { %175 = vadd.xlane.f32.xlu1 %v174_v33 }
 0x105   :  { %v146_v34 = vpop.f32.mrf.mxu0 }
 0x106   :  { %v1176_v35 = vadd.f32 %v146_v34, %v69_v30 }
 0x108   :  { %v177_v36 = vsel %vm173_vm13, %v1176_v35, 0.0 }
 0x109   :  { %178 = vadd.xlane.f32.xlu1 %v177_v36 }
 0x174   :  { %v176_v44 = vpop.xlane.xlu1 %175 }
 0x175   :  { %v187_v45 = vmul.f32 %v1180_v43, %v176_v44 }
 0x177   :  { %v189_v46 = vsub.f32 %v1172_v32, %v187_v45 }
 0x179   :  { %v191_v47 = vmul.f32 %v189_v46, %v189_v46 }
 0x17b   :  { %v193_v48 = vsel %vm173_vm13, %v191_v47, 0.0 }
 0x17c   :  { %194 = vadd.xlane.f32.xlu2 %v193_v48  ;;  %v179_v49 = vpop.xlane.xlu1 %178 }
 0x17d   :  { %v188_v50 = vmul.f32 %v1180_v43, %v179_v49 }
 0x17f   :  { %v190_v51 = vsub.f32 %v1176_v35, %v188_v50 }
 0x181   :  { %v192_v52 = vmul.f32 %v190_v51, %v190_v51 }
 0x183   :  { %v196_v53 = vsel %vm173_vm13, %v192_v52, 0.0 }
 0x184   :  { %197 = vadd.xlane.f32.xlu2 %v196_v53  ;;  %v1081_v53 = vmov -1e+09  }
 0x185   :  { %v171_v54 = vsel %vm169_vm7, 0.0, %v1081_v53  ;;  %v172_v20 = vsel %vm170_vm9, 0.0, %v1081_v53 }
 0x1ef   :  { %v195_v55 = vpop.xlane.xlu2 %194 }
 0x1f0   :  { %v199_v57 = vmul.f32 %v195_v55, %v1180_v43 }
 0x1f2   :  { %v201_v58 = vadd.f32 1e-05, %v199_v57 }
 0x1f4   :  { %1026 = vrsqrt.f32 %v201_v58  ;;  %vm209_vm0 = vweird.f32 %v201_v58 }
 0x1f7   :  { %v198_v59 = vpop.xlane.xlu2 %197 }
 0x1f8   :  { %v200_v60 = vmul.f32 %v198_v59, %v1180_v43 }
 0x1fa   :  { %v1027_v61 = vpop.eup %1026  ;;  %v202_v62 = vadd.f32 1e-05, %v200_v60 }
 0x1fb   :  { %v204_v63 = vmul.f32 %v1027_v61, %v201_v58  ;;  %vm210_vm15 = vweird.f32 %v1027_v61 }
 0x1fc   :  { %1028 = vrsqrt.f32 %v202_v62  ;;  %vm211_vm1 = vmor %vm209_vm0, %vm210_vm15  ;;  %vm219_vm4 = vweird.f32 %v202_v62  ;;  %vm762_vm15 = vcmask 523264  }
 0x1fd   :  { %v205_v0 = vmul.f32 %v1027_v61, %v204_v63 }
 0x1ff   :  { %v206_v1 = vmul.f32 0.5, %v205_v0 }
 0x201   :  { %v207_v2 = vsub.f32 1.5, %v206_v1 }
 0x202   :  { %v1029_v3 = vpop.eup %1028 }
 0x203   :  { %v208_v4 = vmul.f32 %v1027_v61, %v207_v2  ;;  %v214_v5 = vmul.f32 %v1029_v3, %v202_v62  ;;  %vm220_vm3 = vweird.f32 %v1029_v3 }
 0x204   :  { %vm221_vm6 = vmor %vm219_vm4, %vm220_vm3 }
 0x205   :  { %v215_v6 = vmul.f32 %v1029_v3, %v214_v5  ;;  %v212_v7 = vsel %vm211_vm1, %v1027_v61, %v208_v4 }
 0x206   :  { %v223_v10 = vmul.f32 %v212_v7, %v189_v46 }
 0x207   :  { %v216_v8 = vmul.f32 0.5, %v215_v6 }
 0x208   :  { %v226_v15 = vmul.f32 %v1016_v11, %v223_v10 }
 0x209   :  { %v217_v9 = vsub.f32 1.5, %v216_v8 }
 0x20a   :  { %v229_v19 = vadd.f32 %v1017_v17, %v226_v15 }
 0x20b   :  { %v218_v12 = vmul.f32 %v1029_v3, %v217_v9 }
 0x20d   :  { %v222_v13 = vsel %vm221_vm6, %v1029_v3, %v218_v12 }
 0x20e   :  { %v224_v14 = vmul.f32 %v222_v13, %v190_v51 }
 0x210   :  { %v227_v18 = vmul.f32 %v1016_v11, %v224_v14 }
 0x212   :  { %v230_v22 = vadd.f32 %v1017_v17, %v227_v18 }
 0x214   :  { %v231_v23 = vpack.c.bf16 %v230_v22, %v229_v19 }
 0x216   :  { %915 = vmatmul.msk.bf16.vlgmr.msra.gmra.mxu1 %vm173_vm13, %v231_v23 }
 0x293   :  { %v256_v24 = vpop.f32.mrf.mxu1 }
 0x294   :  { %v261_v25 = vpack.c.bf16 %v256_v24, %v256_v24 }
 0x296   :  { %265 = vrot.lane.b32.xlu2 %v261_v25, %s1077_s23  ;;  %273 = vrot.lane.b32.xlu0 %v261_v25, %s1078_s24  ;;  %v277_v28 = vunpack.c.l.b16 %v261_v25 }
 0x29b   :  { %v258_v26 = vpop.f32.mrf.mxu1 }
 0x29c   :  { %v262_v27 = vpack.c.bf16 %v258_v26, %v258_v26 }
 0x29e   :  { %269 = vrot.lane.b32.xlu0 %v261_v25, %s1079_s25  ;;  %275 = vrot.lane.b32.xlu1 %v262_v27, %s1078_s24  ;;  %v278_v29 = vunpack.c.l.b16 %v262_v27 }
 0x2a0   :  { %v1203_v30 = vpack.c.b16 %v278_v29, %v277_v28 }
 0x2a2   :  { %280 = vrot.lane.b32.xlu2 %v1203_v30, %s1080_s1 }
 0x2a6   :  { %267 = vrot.lane.b32.xlu0 %v262_v27, %s1077_s23 }
 0x2ae   :  { %271 = vrot.lane.b32.xlu0 %v262_v27, %s1079_s25 }
 0x2f0   :  { %v266_v31 = vpop.permute.xlu2 %265 }
 0x2f1   :  { %v303_v44 = vunpack.c.l.b16 %v266_v31 }
 0x2fc   :  { %v281_v33 = vpop.permute.xlu2 %280 }
 0x2fd   :  { %v287_v34 = vsel %vm282_vm10, %v281_v33, 0 }
 0x2fe   :  { %296 = vmatpush.bf16.xpose.msra.mxu2 %v287_v34 }
 0x305   :  { %916 = vmatmul.msk.bf16.vlgmr.msra.gmra.mxu2 %vm282_vm10, %v1203_v30 }
 0x308   :  { %v274_v36 = vpop.permute.xlu0 %273 }
 0x309   :  { %v353_v39 = vunpack.c.l.b16 %v274_v36 }
 0x310   :  { %v270_v37 = vpop.permute.xlu0 %269  ;;  %v276_v38 = vpop.permute.xlu1 %275 }
 0x311   :  { %v354_v40 = vunpack.c.l.b16 %v276_v38  ;;  %v328_v48 = vunpack.c.l.b16 %v270_v37 }
 0x313   :  { %v1209_v41 = vpack.c.b16 %v354_v40, %v353_v39 }
 0x315   :  { %356 = vrot.lane.b32.xlu1 %v1209_v41, %s1080_s1 }
 0x318   :  { %v268_v42 = vpop.permute.xlu0 %267 }
 0x319   :  { %v304_v45 = vunpack.c.l.b16 %v268_v42 }
 0x31b   :  { %v1212_v46 = vpack.c.b16 %v304_v45, %v303_v44 }
 0x31d   :  { %306 = vrot.lane.b32.xlu0 %v1212_v46, %s1080_s1 }
 0x320   :  { %v272_v47 = vpop.permute.xlu0 %271 }
 0x321   :  { %v329_v49 = vunpack.c.l.b16 %v272_v47 }
 0x323   :  { %v1215_v50 = vpack.c.b16 %v329_v49, %v328_v48 }
 0x325   :  { %331 = vrot.lane.b32.xlu2 %v1215_v50, %s1080_s1 }
 0x37f   :  { %v332_v51 = vpop.permute.xlu2 %331 }
 0x380   :  { %v337_v52 = vsel %vm282_vm10, %v332_v51, 0 }
 0x381   :  { %346 = vmatpush.bf16.xpose.msrb.mxu1 %v337_v52 }
 0x387   :  { %v357_v55 = vpop.permute.xlu1 %356 }
 0x388   :  { %v298_v56 = vpop.f32.mrf.mxu2  ;;  %918 = vmatmul.msk.bf16.vlgmr.msrb.gmra.mxu1 %vm282_vm10, %v1215_v50  ;;  %v362_v57 = vsel %vm282_vm10, %v357_v55, 0 }
 0x389   :  { %v299_v58 = vadd.f32 %v298_v56, %v171_v54  ;;  %371 = vmatpush.bf16.xpose.msrb.mxu2 %v362_v57 }
 0x38b   :  { %v379_v59 = vsel %vm378_vm11, %v299_v58, -inf }
 0x38c   :  { %380 = vmax.xlane.f32.xlu1 %v379_v59 }
 0x38f   :  { %v307_v60 = vpop.permute.xlu0 %306 }
 0x390   :  { %v300_v61 = vpop.f32.mrf.mxu2  ;;  %919 = vmatmul.msk.bf16.vlgmr.msrb.gmra.mxu2 %vm282_vm10, %v1209_v41  ;;  %v312_v62 = vsel %vm282_vm10, %v307_v60, 0 }
 0x391   :  { %v301_v63 = vadd.f32 %v300_v61, %v172_v20  ;;  %321 = vmatpush.bf16.xpose.msra.mxu3 %v312_v62 }
 0x393   :  { %v382_v0 = vsel %vm378_vm11, %v301_v63, -inf }
 0x394   :  { %383 = vmax.xlane.f32.xlu0 %v382_v0 }
 0x398   :  { %917 = vmatmul.msk.bf16.vlgmr.msra.gmra.mxu3 %vm282_vm10, %v1212_v46 }
 0x3ff   :  { %v381_v2 = vpop.xlane.xlu1 %380 }
 0x400   :  { %v403_v5 = vsub.f32 %v299_v58, %v381_v2 }
 0x402   :  { %v411_v7 = vmul.f32 1.442695, %v403_v5 }
 0x404   :  { %1030 = vpow2.f32 %v411_v7 }
 0x405   :  { %v348_v21 = vpop.f32.mrf.mxu1 }
 0x406   :  { %v349_v1 = vadd.f32 %v348_v21, %v171_v54 }
 0x407   :  { %v384_v8 = vpop.xlane.xlu0 %383 }
 0x408   :  { %v391_v16 = vsel %vm378_vm11, %v349_v1, -inf  ;;  %v404_v13 = vsub.f32 %v301_v63, %v384_v8 }
 0x409   :  { %392 = vmax.xlane.f32.xlu2 %v391_v16 }
 0x40a   :  { %v413_v18 = vmul.f32 1.442695, %v404_v13  ;;  %v1031_v22 = vpop.eup %1030 }
 0x40b   :  { %v427_v25 = vsel %vm378_vm11, %v1031_v22, 0.0 }
 0x40c   :  { %1032 = vpow2.f32 %v413_v18 }
 0x40d   :  { %v350_v17 = vpop.f32.mrf.mxu1 }
 0x40e   :  { %v351_v19 = vadd.f32 %v350_v17, %v172_v20 }
 0x410   :  { %v394_v26 = vsel %vm378_vm11, %v351_v19, -inf }
 0x412   :  { %v1033_v28 = vpop.eup %1032 }
 0x413   :  { %v373_v3 = vpop.f32.mrf.mxu2  ;;  %v430_v29 = vsel %vm378_vm11, %v1033_v28, 0.0 }
 0x414   :  { %v374_v4 = vadd.f32 %v373_v3, %v171_v54 }
 0x416   :  { %v397_v6 = vsel %vm378_vm11, %v374_v4, -inf }
 0x417   :  { %398 = vmax.xlane.f32.xlu2 %v397_v6 }
 0x41b   :  { %v323_v9 = vpop.f32.mrf.mxu3  ;;  %v375_v10 = vpop.f32.mrf.mxu2 }
 0x41c   :  { %v324_v11 = vadd.f32 %v323_v9, %v171_v54  ;;  %v376_v12 = vadd.f32 %v375_v10, %v172_v20 }
 0x41e   :  { %v400_v14 = vsel %vm378_vm11, %v376_v12, -inf  ;;  %v385_v15 = vsel %vm378_vm11, %v324_v11, -inf }
 0x41f   :  { %401 = vmax.xlane.f32.xlu0 %v400_v14  ;;  %386 = vmax.xlane.f32.xlu1 %v385_v15 }
 0x423   :  { %v325_v23 = vpop.f32.mrf.mxu3 }
 0x424   :  { %v326_v24 = vadd.f32 %v325_v23, %v172_v20 }
 0x426   :  { %v388_v27 = vsel %vm378_vm11, %v326_v24, -inf }
 0x427   :  { %428 = vadd.xlane.f32.xlu0 %v427_v25  ;;  %395 = vmax.xlane.f32.xlu1 %v394_v26 }
 0x428   :  { %389 = vmax.xlane.f32.xlu2 %v388_v27 }
 0x42f   :  { %431 = vadd.xlane.f32.xlu1 %v430_v29 }
 0x440   :  { %480 = vrot.lane.b32.xlu2 %v1203_v30, %s1082_s26 }
 0x448   :  { %530 = vrot.lane.b32.xlu2 %v1215_v50, %s1082_s26 }
 0x47c   :  { %v393_v31 = vpop.xlane.xlu2 %392 }
 0x47d   :  { %v407_v33 = vsub.f32 %v349_v1, %v393_v31 }
 0x47f   :  { %v419_v34 = vmul.f32 1.442695, %v407_v33 }
 0x481   :  { %1034 = vpow2.f32 %v419_v34 }
 0x487   :  { %v1251_v36 = vpop.eup %1034 }
 0x488   :  { %v439_v37 = vsel %vm378_vm11, %v1251_v36, 0.0 }
 0x489   :  { %440 = vadd.xlane.f32.xlu0 %v439_v37 }
 0x48a   :  { %v399_v38 = vpop.xlane.xlu2 %398 }
 0x48b   :  { %v409_v39 = vsub.f32 %v374_v4, %v399_v38 }
 0x48d   :  { %v423_v40 = vmul.f32 1.442695, %v409_v39 }
 0x48f   :  { %1036 = vpow2.f32 %v423_v40 }
 0x492   :  { %v402_v42 = vpop.xlane.xlu0 %401  ;;  %v387_v44 = vpop.xlane.xlu1 %386 }
 0x493   :  { %v405_v30 = vsub.f32 %v324_v11, %v387_v44  ;;  %v410_v53 = vsub.f32 %v376_v12, %v402_v42 }
 0x495   :  { %v1255_v45 = vpop.eup %1036  ;;  %v415_v47 = vmul.f32 1.442695, %v405_v30  ;;  %v425_v57 = vmul.f32 1.442695, %v410_v53 }
 0x496   :  { %v445_v48 = vsel %vm378_vm11, %v1255_v45, 0.0 }
 0x497   :  { %446 = vadd.xlane.f32.xlu0 %v445_v48  ;;  %1038 = vpow2.f32 %v415_v47 }
 0x49a   :  { %v429_v49 = vpop.xlane.xlu0 %428  ;;  %v396_v50 = vpop.xlane.xlu1 %395 }
 0x49b   :  { %v408_v51 = vsub.f32 %v351_v19, %v396_v50  ;;  %v390_v52 = vpop.xlane.xlu2 %389  ;;  %1040 = vrcp.f32 %v429_v49 }
 0x49c   :  { %v406_v61 = vsub.f32 %v326_v24, %v390_v52 }
 0x49d   :  { %v421_v54 = vmul.f32 1.442695, %v408_v51  ;;  %v1259_v55 = vpop.eup %1038 }
 0x49e   :  { %v433_v56 = vsel %vm378_vm11, %v1259_v55, 0.0  ;;  %v417_v21 = vmul.f32 1.442695, %v406_v61 }
 0x49f   :  { %1042 = vpow2.f32 %v421_v54  ;;  %434 = vadd.xlane.f32.xlu0 %v433_v56 }
 0x4a1   :  { %v1041_v59 = vpop.eup %1040 }
 0x4a2   :  { %v432_v58 = vpop.xlane.xlu1 %431  ;;  %v459_v62 = vmul.f32 %v1041_v59, %v1031_v22 }
 0x4a3   :  { %1044 = vrcp.f32 %v432_v58  ;;  %v481_v20 = vpop.permute.xlu2 %480 }
 0x4a4   :  { %493 = vmatpush.bf16.msrb.mxu3 %v481_v20  ;;  %1046 = vpow2.f32 %v425_v57  ;;  %v467_v1 = vpack.c.bf16 %v459_v62, %v459_v62  ;;  %v983_v62 = vld [vmem:[%s1370_s3 + $0x18] sm:$0xff] }
 0x4a5   :  { %v1043_v60 = vpop.eup %1042  ;;  %1048 = vpow2.f32 %v417_v21  ;;  %628 = vmatpush.bf16.msrb.mxu0 %v983_v62 }
 0x4a6   :  { %v442_v63 = vsel %vm378_vm11, %v1043_v60, 0.0  ;;  %v477_v5 = vunpack.c.l.b16 %v467_v1 }
 0x4a7   :  { %443 = vadd.xlane.f32.xlu1 %v442_v63  ;;  %v982_v63 = vld [vmem:[%s1370_s3 + $0x10] sm:$0xff] }
 0x4a9   :  { %v1045_v0 = vpop.eup %1044  ;;  %629 = vmatpush.bf16.msrb.mxu0 %v982_v63 }
 0x4aa   :  { %v460_v16 = vmul.f32 %v1045_v0, %v1033_v28  ;;  %v1047_v2 = vpop.eup %1046 }
 0x4ab   :  { %v531_v3 = vpop.permute.xlu2 %530  ;;  %v448_v7 = vsel %vm378_vm11, %v1047_v2, 0.0  ;;  %v1049_v9 = vpop.eup %1048 }
 0x4ac   :  { %v468_v4 = vpack.c.bf16 %v460_v16, %v460_v16  ;;  %543 = vmatpush.bf16.msra.mxu2 %v531_v3  ;;  %v436_v10 = vsel %vm378_vm11, %v1049_v9, 0.0 }
 0x4ae   :  { %v478_v6 = vunpack.c.l.b16 %v468_v4 }
 0x4af   :  { %449 = vadd.xlane.f32.xlu1 %v448_v7 }
 0x4b0   :  { %v479_v8 = vpack.c.b16 %v478_v6, %v477_v5 }
 0x4b2   :  { %920 = vmatmul.msk.bf16.vlgmr.msrb.gmra.mxu3 %vm378_vm11, %v479_v8 }
 0x4b3   :  { %555 = vrot.lane.b32.xlu0 %v1209_v41, %s1082_s26 }
 0x4b7   :  { %437 = vadd.xlane.f32.xlu1 %v436_v10 }
 0x4d0   :  { %505 = vrot.lane.b32.xlu1 %v1212_v46, %s1082_s26 }
 0x4fc   :  { %v441_v11 = vpop.xlane.xlu0 %440 }
 0x4fd   :  { %1050 = vrcp.f32 %v441_v11 }
 0x503   :  { %v1051_v14 = vpop.eup %1050 }
 0x504   :  { %v463_v15 = vmul.f32 %v1051_v14, %v1251_v36 }
 0x506   :  { %v471_v19 = vpack.c.bf16 %v463_v15, %v463_v15 }
 0x508   :  { %v527_v25 = vunpack.c.l.b16 %v471_v19 }
 0x50a   :  { %v447_v12 = vpop.xlane.xlu0 %446 }
 0x512   :  { %v435_v17 = vpop.xlane.xlu0 %434 }
 0x51a   :  { %v444_v13 = vpop.xlane.xlu1 %443 }
 0x51b   :  { %1052 = vrcp.f32 %v444_v13 }
 0x51c   :  { %1054 = vrcp.f32 %v447_v12 }
 0x521   :  { %v1053_v18 = vpop.eup %1052 }
 0x522   :  { %v464_v22 = vmul.f32 %v1053_v18, %v1043_v60  ;;  %v450_v41 = vpop.xlane.xlu1 %449  ;;  %v1055_v23 = vpop.eup %1054 }
 0x523   :  { %1056 = vrcp.f32 %v450_v41  ;;  %v465_v46 = vmul.f32 %v1055_v23, %v1255_v45 }
 0x524   :  { %v472_v24 = vpack.c.bf16 %v464_v22, %v464_v22 }
 0x525   :  { %v556_v27 = vpop.permute.xlu0 %555  ;;  %v473_v31 = vpack.c.bf16 %v465_v46, %v465_v46 }
 0x526   :  { %v528_v26 = vunpack.c.l.b16 %v472_v24  ;;  %568 = vmatpush.bf16.msra.mxu3 %v556_v27 }
 0x527   :  { %v552_v37 = vunpack.c.l.b16 %v473_v31 }
 0x528   :  { %v529_v28 = vpack.c.b16 %v528_v26, %v527_v25 }
 0x529   :  { %v1057_v29 = vpop.eup %1056 }
 0x52a   :  { %v466_v33 = vmul.f32 %v1057_v29, %v1047_v2  ;;  %922 = vmatmul.msk.bf16.vlgmr.msra.gmra.mxu2 %vm378_vm11, %v529_v28  ;;  %v438_v36 = vpop.xlane.xlu1 %437  ;;  %v985_v29 = vld [vmem:[%s1370_s3 + $0x28] sm:$0xff] }
 0x52b   :  { %1058 = vrcp.f32 %v438_v36  ;;  %v984_v36 = vld [vmem:[%s1370_s3 + $0x20] sm:$0xff] }
 0x52c   :  { %v474_v34 = vpack.c.bf16 %v466_v33, %v466_v33  ;;  %1060 = vrcp.f32 %v435_v17 }
 0x52e   :  { %v553_v38 = vunpack.c.l.b16 %v474_v34 }
 0x530   :  { %v554_v39 = vpack.c.b16 %v553_v38, %v552_v37 }
 0x531   :  { %v1059_v40 = vpop.eup %1058 }
 0x532   :  { %923 = vmatmul.msk.bf16.vlgmr.msra.gmra.mxu3 %vm378_vm11, %v554_v39  ;;  %v1061_v42 = vpop.eup %1060  ;;  %v462_v44 = vmul.f32 %v1059_v40, %v1049_v9 }
 0x533   :  { %v461_v30 = vmul.f32 %v1061_v42, %v1259_v55 }
 0x534   :  { %v470_v45 = vpack.c.bf16 %v462_v44, %v462_v44 }
 0x535   :  { %v469_v47 = vpack.c.bf16 %v461_v30, %v461_v30  ;;  %v495_v52 = vpop.f32.mrf.mxu3 }
 0x536   :  { %v503_v48 = vunpack.c.l.b16 %v470_v45 }
 0x537   :  { %v502_v49 = vunpack.c.l.b16 %v469_v47 }
 0x539   :  { %v504_v51 = vpack.c.b16 %v503_v48, %v502_v49 }
 0x53d   :  { %v497_v53 = vpop.f32.mrf.mxu3 }
 0x542   :  { %v506_v50 = vpop.permute.xlu1 %505 }
 0x543   :  { %518 = vmatpush.bf16.msra.mxu1 %v506_v50 }
 0x546   :  { %921 = vmatmul.msk.bf16.vlgmr.msra.gmra.mxu1 %vm378_vm11, %v504_v51 }
 0x547   :  { %711 = vmatpush.bf16.msrb.mxu1 %v985_v29 }
 0x54b   :  { %712 = vmatpush.bf16.msrb.mxu1 %v984_v36 }
 0x5ad   :  { %v545_v59 = vpop.f32.mrf.mxu2 }
 0x5b5   :  { %v570_v54 = vpop.f32.mrf.mxu3  ;;  %v547_v60 = vpop.f32.mrf.mxu2 }
 0x5b6   :  { %v1006_v61 = vpack.i.bf16 %v547_v60, %v545_v59  ;;  %v1019_v59 = vld [vmem:[%s1369_s2 + $0x3] ss:$0 sm:$0xff] }
 0x5bd   :  { %v572_v56 = vpop.f32.mrf.mxu3 }
 0x5be   :  { %v1011_v57 = vpack.i.bf16 %v572_v56, %v570_v54  ;;  %v1018_v54 = vld [vmem:[%s1369_s2 + $0x2] ss:$0 sm:$0xff] }
 0x5c0   :  { %1012 = vrot.lane.b32.xlu0 %v1011_v57, %s1083_s27 }
 0x5c3   :  { %v520_v58 = vpop.f32.mrf.mxu1 }
 0x5cb   :  { %v522_v20 = vpop.f32.mrf.mxu1 }
 0x5cc   :  { %v1001_v55 = vpack.i.bf16 %v522_v20, %v520_v58 }
 0x5ce   :  { %1002 = vrot.lane.b32.xlu2 %v1001_v55, %s1084_s28 }
 0x5d6   :  { %1007 = vrot.lane.b32.xlu2 %v1006_v61, %s1085_s0 }
 0x628   :  { %v1003_v0 = vpop.permute.xlu2 %1002 }
 0x629   :  { %v1005_v21 = vunpack.i.h.bf16 %v1003_v0  ;;  %v1004_v1 = vunpack.i.l.bf16 %v1003_v0  ;;  %v979_v0 = vld [vmem:[%s1368_s4 + $0x58] sm:$0xff] }
 0x62a   :  { %770 = vmatpush.bf16.msrb.mxu2 %v979_v0 }
 0x62b   :  { %v600_v4 = vsel %vm282_vm10, %v497_v53, %v1005_v21  ;;  %v599_v5 = vsel %vm282_vm10, %v495_v52, %v1004_v1  ;;  %v978_v21 = vld [vmem:[%s1368_s4 + $0x50] sm:$0xff]  ;;  %v977_v1 = vld [vmem:[%s1368_s4 + $0x48] sm:$0xff] }
 0x62e   :  { %771 = vmatpush.bf16.msrb.mxu2 %v978_v21 }
 0x630   :  { %v1008_v16 = vpop.permute.xlu2 %1007 }
 0x631   :  { %v1010_v2 = vunpack.i.h.bf16 %v1008_v16  ;;  %v1009_v3 = vunpack.i.l.bf16 %v1008_v16  ;;  %v976_v16 = vld [vmem:[%s1368_s4 + $0x40] sm:$0xff] }
 0x632   :  { %v1013_v6 = vpop.permute.xlu0 %1012  ;;  %772 = vmatpush.bf16.msrb.mxu2 %v977_v1 }
 0x633   :  { %v601_v7 = vsel %vm378_vm11, %v599_v5, %v1009_v3  ;;  %v602_v8 = vsel %vm378_vm11, %v600_v4, %v1010_v2  ;;  %v1015_v9 = vunpack.i.h.bf16 %v1013_v6  ;;  %v1014_v10 = vunpack.i.l.bf16 %v1013_v6  ;;  %v1020_v2 = vld [vmem:[%s1369_s2 + $0x7] ss:$0 sm:$0xff] }
 0x635   :  { %v604_v11 = vsel %vm603_vm2, %v601_v7, %v1014_v10  ;;  %v605_v12 = vsel %vm603_vm2, %v602_v8, %v1015_v9 }
 0x636   :  { %v606_v13 = vpack.c.bf16 %v605_v12, %v604_v11  ;;  %773 = vmatpush.bf16.msrb.mxu2 %v976_v16 }
 0x638   :  { %932 = vmatmul.msk.bf16.vlgmr.msrb.gmra.mxu0 %vm173_vm13, %v606_v13 }
 0x6b5   :  { %v631_v14 = vpop.f32.mrf.mxu0 }
 0x6b6   :  { %v1289_v15 = vadd.f32 %v631_v14, %v1172_v32 }
 0x6b8   :  { %v638_v17 = vsel %vm173_vm13, %v1289_v15, 0.0 }
 0x6b9   :  { %639 = vadd.xlane.f32.xlu2 %v638_v17 }
 0x6bd   :  { %v633_v18 = vpop.f32.mrf.mxu0 }
 0x6be   :  { %v1294_v19 = vadd.f32 %v633_v18, %v1176_v35 }
 0x6c0   :  { %v641_v22 = vsel %vm173_vm13, %v1294_v19, 0.0 }
 0x6c1   :  { %642 = vadd.xlane.f32.xlu1 %v641_v22 }
 0x72c   :  { %v640_v41 = vpop.xlane.xlu2 %639 }
 0x72d   :  { %v644_v23 = vmul.f32 %v640_v41, %v1180_v43 }
 0x72f   :  { %v646_v24 = vsub.f32 %v1289_v15, %v644_v23 }
 0x731   :  { %v648_v25 = vmul.f32 %v646_v24, %v646_v24 }
 0x733   :  { %v650_v32 = vsel %vm173_vm13, %v648_v25, 0.0 }
 0x734   :  { %651 = vadd.xlane.f32.xlu0 %v650_v32  ;;  %v643_v46 = vpop.xlane.xlu1 %642 }
 0x735   :  { %v645_v26 = vmul.f32 %v643_v46, %v1180_v43 }
 0x737   :  { %v647_v27 = vsub.f32 %v1294_v19, %v645_v26 }
 0x739   :  { %v649_v35 = vmul.f32 %v647_v27, %v647_v27 }
 0x73b   :  { %v653_v28 = vsel %vm173_vm13, %v649_v35, 0.0  ;;  %v1021_v35 = vld [vmem:[%s1369_s2 + $0x6] ss:$0 sm:$0xff] }
 0x73c   :  { %654 = vadd.xlane.f32.xlu2 %v653_v28 }
 0x7a7   :  { %v652_v31 = vpop.xlane.xlu0 %651 }
 0x7a8   :  { %v656_v33 = vmul.f32 %v652_v31, %v1180_v43 }
 0x7aa   :  { %v658_v34 = vadd.f32 1e-05, %v656_v33 }
 0x7ac   :  { %1062 = vrsqrt.f32 %v658_v34  ;;  %vm666_vm7 = vweird.f32 %v658_v34 }
 0x7af   :  { %v655_v37 = vpop.xlane.xlu2 %654 }
 0x7b0   :  { %v657_v38 = vmul.f32 %v655_v37, %v1180_v43 }
 0x7b2   :  { %v1063_v39 = vpop.eup %1062  ;;  %v659_v40 = vadd.f32 1e-05, %v657_v38 }
 0x7b3   :  { %v661_v42 = vmul.f32 %v1063_v39, %v658_v34  ;;  %vm667_vm5 = vweird.f32 %v1063_v39 }
 0x7b4   :  { %1064 = vrsqrt.f32 %v659_v40  ;;  %vm668_vm8 = vmor %vm666_vm7, %vm667_vm5  ;;  %vm676_vm12 = vweird.f32 %v659_v40 }
 0x7b5   :  { %v662_v44 = vmul.f32 %v1063_v39, %v661_v42 }
 0x7b7   :  { %v663_v30 = vmul.f32 0.5, %v662_v44 }
 0x7b9   :  { %v664_v45 = vsub.f32 1.5, %v663_v30 }
 0x7ba   :  { %v1065_v47 = vpop.eup %1064 }
 0x7bb   :  { %v665_v48 = vmul.f32 %v1063_v39, %v664_v45  ;;  %v671_v49 = vmul.f32 %v1065_v47, %v659_v40  ;;  %vm677_vm9 = vweird.f32 %v1065_v47 }
 0x7bc   :  { %vm678_vm14 = vmor %vm676_vm12, %vm677_vm9 }
 0x7bd   :  { %v672_v50 = vmul.f32 %v1065_v47, %v671_v49  ;;  %v669_v51 = vsel %vm668_vm8, %v1063_v39, %v665_v48 }
 0x7be   :  { %v680_v56 = vmul.f32 %v669_v51, %v646_v24 }
 0x7bf   :  { %v673_v52 = vmul.f32 0.5, %v672_v50 }
 0x7c0   :  { %v683_v20 = vmul.f32 %v1018_v54, %v680_v56 }
 0x7c1   :  { %v674_v53 = vsub.f32 1.5, %v673_v52 }
 0x7c2   :  { %v686_v61 = vadd.f32 %v1019_v59, %v683_v20 }
 0x7c3   :  { %v675_v57 = vmul.f32 %v1065_v47, %v674_v53  ;;  %v986_v53 = vld [vmem:[%s1370_s3 + $0x30] sm:$0xff] }
 0x7c5   :  { %v679_v58 = vsel %vm678_vm14, %v1065_v47, %v675_v57 }
 0x7c6   :  { %v681_v55 = vmul.f32 %v679_v58, %v647_v27 }
 0x7c8   :  { %v684_v60 = vmul.f32 %v1018_v54, %v681_v55 }
 0x7ca   :  { %v687_v62 = vadd.f32 %v1019_v59, %v684_v60 }
 0x7cc   :  { %v688_v63 = vpack.c.bf16 %v687_v62, %v686_v61 }
 0x7ce   :  { %941 = vmatmul.msk.bf16.vlgmr.msrb.gmra.mxu1 %vm173_vm13, %v688_v63 }
 0x84b   :  { %v714_v3 = vpop.f32.mrf.mxu1 }
 0x84c   :  { %v715_v4 = vadd.f32 %v1020_v2, %v714_v3 }
 0x84e   :  { %v721_v5 = vmul.f32 0.044715, %v715_v4  ;;  %v719_v24 = vmul.f32 0.5, %v715_v4 }
 0x850   :  { %v723_v6 = vmul.f32 %v721_v5, %v715_v4  ;;  %v1023_v5 = vld [vmem:[%s1369_s2 + $0x5] ss:$0 sm:$0xff] }
 0x852   :  { %v725_v7 = vmul.f32 %v723_v6, %v715_v4 }
 0x853   :  { %v716_v8 = vpop.f32.mrf.mxu1 }
 0x854   :  { %v727_v9 = vadd.f32 %v725_v7, %v715_v4  ;;  %v717_v10 = vadd.f32 %v1020_v2, %v716_v8 }
 0x856   :  { %v722_v11 = vmul.f32 0.044715, %v717_v10  ;;  %v729_v12 = vmul.f32 0.7978846, %v727_v9  ;;  %v720_v25 = vmul.f32 0.5, %v717_v10 }
 0x858   :  { %v724_v13 = vmul.f32 %v722_v11, %v717_v10  ;;  %1066 = vtanh.f32 %v729_v12 }
 0x85a   :  { %v726_v14 = vmul.f32 %v724_v13, %v717_v10 }
 0x85c   :  { %v728_v17 = vadd.f32 %v726_v14, %v717_v10 }
 0x85e   :  { %v730_v18 = vmul.f32 0.7978846, %v728_v17  ;;  %v1067_v22 = vpop.eup %1066 }
 0x85f   :  { %v733_v41 = vadd.f32 1.0, %v1067_v22 }
 0x860   :  { %1068 = vtanh.f32 %v730_v18 }
 0x861   :  { %v735_v46 = vmul.f32 %v733_v41, %v719_v24 }
 0x866   :  { %v1069_v23 = vpop.eup %1068 }
 0x867   :  { %v734_v32 = vadd.f32 1.0, %v1069_v23 }
 0x869   :  { %v736_v26 = vmul.f32 %v734_v32, %v720_v25 }
 0x86b   :  { %v737_v27 = vpack.c.bf16 %v736_v26, %v735_v46 }
 0x86d   :  { %958 = vmatmul.msk.bf16.vlgmr.msrb.gmra.mxu2 %vm762_vm15, %v737_v27 }
 0x8f0   :  { %v775_v28 = vpop.f32.mrf.mxu2 }
 0x8f1   :  { %v780_v29 = vadd.f32 %v775_v28, %v1289_v15 }
 0x8f3   :  { %v783_v31 = vadd.f32 %v1021_v35, %v780_v29 }
 0x8f5   :  { %v785_v33 = vsel %vm173_vm13, %v783_v31, 0.0 }
 0x8f6   :  { %786 = vadd.xlane.f32.xlu1 %v785_v33 }
 0x8f8   :  { %v777_v34 = vpop.f32.mrf.mxu2 }
 0x8f9   :  { %v781_v36 = vadd.f32 %v777_v34, %v1294_v19  ;;  %v987_v19 = vld [vmem:[%s1370_s3 + $0x38] sm:$0xff] }
 0x8fa   :  { %857 = vmatpush.bf16.msrb.mxu3 %v987_v19 }
 0x8fb   :  { %v784_v37 = vadd.f32 %v1021_v35, %v781_v36 }
 0x8fd   :  { %v788_v38 = vsel %vm173_vm13, %v784_v37, 0.0 }
 0x8fe   :  { %789 = vadd.xlane.f32.xlu0 %v788_v38  ;;  %858 = vmatpush.bf16.msrb.mxu3 %v986_v53 }
 0x969   :  { %v787_v39 = vpop.xlane.xlu1 %786 }
 0x96a   :  { %v791_v40 = vmul.f32 %v787_v39, %v1180_v43 }
 0x96c   :  { %v793_v42 = vsub.f32 %v783_v31, %v791_v40 }
 0x96e   :  { %v795_v44 = vmul.f32 %v793_v42, %v793_v42 }
 0x970   :  { %v797_v30 = vsel %vm173_vm13, %v795_v44, 0.0 }
 0x971   :  { %798 = vadd.xlane.f32.xlu2 %v797_v30  ;;  %v790_v15 = vpop.xlane.xlu0 %789 }
 0x972   :  { %v792_v45 = vmul.f32 %v790_v15, %v1180_v43 }
 0x974   :  { %v794_v47 = vsub.f32 %v784_v37, %v792_v45 }
 0x976   :  { %v796_v48 = vmul.f32 %v794_v47, %v794_v47 }
 0x978   :  { %v800_v49 = vsel %vm173_vm13, %v796_v48, 0.0 }
 0x979   :  { %801 = vadd.xlane.f32.xlu1 %v800_v49 }
 0x9e4   :  { %v799_v50 = vpop.xlane.xlu2 %798 }
 0x9e5   :  { %v803_v51 = vmul.f32 %v799_v50, %v1180_v43 }
 0x9e7   :  { %v805_v52 = vadd.f32 1e-05, %v803_v51 }
 0x9e9   :  { %1070 = vrsqrt.f32 %v805_v52  ;;  %vm813_vm1 = vweird.f32 %v805_v52 }
 0x9ec   :  { %v802_v54 = vpop.xlane.xlu1 %801 }
 0x9ed   :  { %v804_v56 = vmul.f32 %v802_v54, %v1180_v43  ;;  %v1022_v43 = vld [vmem:[%s1369_s2 + $0x4] ss:$0 sm:$0xff] }
 0x9ef   :  { %v1071_v57 = vpop.eup %1070  ;;  %v806_v58 = vadd.f32 1e-05, %v804_v56 }
 0x9f0   :  { %v808_v59 = vmul.f32 %v1071_v57, %v805_v52  ;;  %vm814_vm0 = vweird.f32 %v1071_v57 }
 0x9f1   :  { %1072 = vrsqrt.f32 %v806_v58  ;;  %vm815_vm3 = vmor %vm813_vm1, %vm814_vm0  ;;  %vm823_vm6 = vweird.f32 %v806_v58 }
 0x9f2   :  { %v809_v20 = vmul.f32 %v1071_v57, %v808_v59 }
 0x9f4   :  { %v810_v55 = vmul.f32 0.5, %v809_v20 }
 0x9f6   :  { %v811_v60 = vsub.f32 1.5, %v810_v55 }
 0x9f7   :  { %v1073_v61 = vpop.eup %1072 }
 0x9f8   :  { %v812_v62 = vmul.f32 %v1071_v57, %v811_v60  ;;  %v818_v63 = vmul.f32 %v1073_v61, %v806_v58  ;;  %vm824_vm4 = vweird.f32 %v1073_v61 }
 0x9f9   :  { %vm825_vm10 = vmor %vm823_vm6, %vm824_vm4 }
 0x9fa   :  { %v819_v0 = vmul.f32 %v1073_v61, %v818_v63  ;;  %v816_v21 = vsel %vm815_vm3, %v1071_v57, %v812_v62 }
 0x9fb   :  { %v827_v2 = vmul.f32 %v816_v21, %v793_v42 }
 0x9fc   :  { %v820_v1 = vmul.f32 0.5, %v819_v0 }
 0x9fd   :  { %v830_v6 = vmul.f32 %v1022_v43, %v827_v2 }
 0x9fe   :  { %v821_v16 = vsub.f32 1.5, %v820_v1 }
 0x9ff   :  { %v833_v9 = vadd.f32 %v1023_v5, %v830_v6 }
 0xa00   :  { %v822_v3 = vmul.f32 %v1073_v61, %v821_v16 }
 0xa02   :  { %v826_v4 = vsel %vm825_vm10, %v1073_v61, %v822_v3 }
 0xa03   :  { %v828_v7 = vmul.f32 %v826_v4, %v794_v47 }
 0xa05   :  { %v831_v8 = vmul.f32 %v1022_v43, %v828_v7 }
 0xa07   :  { %v834_v10 = vadd.f32 %v1023_v5, %v831_v8 }
 0xa09   :  { %v835_v11 = vpack.c.bf16 %v834_v10, %v833_v9 }
 0xa0b   :  { %967 = vmatmul.msk.bf16.vlgmr.msrb.gmra.mxu3 %vm173_vm13, %v835_v11 }
 0xa8e   :  { %v860_v12 = vpop.f32.mrf.mxu3 }
 0xa8f   :  { %865 = vst [vmem:[%s1371_s5] sm:$0xff] %v860_v12 }
 0xa96   :  { %v862_v13 = vpop.f32.mrf.mxu3 }
 0xa97   :  { %866 = vst [vmem:[%s1371_s5 + $0x8] sm:$0xff] %v862_v13 }

</bundles_post_ra>
